<compile_context>
chip_gen: v5e
topology: v5e:2x2
jax: 0.10.0
libtpu: 0.0.40
codegen_flags: <defaults>
</compile_context>

<pallas_src>
import functools

import jax
import jax.numpy as jnp
import numpy as np
from jax import lax
from jax.experimental import pallas as pl
from jax.experimental.pallas import tpu as pltpu


def _round_up(x, m):
    return ((x + m - 1) // m) * m


def _pick_row_tile(m):
    for t in (512, 256, 128, 64, 32, 16, 8):
        if t <= m and m % t == 0:
            return t
    return m


def _pick_col_tile(n):
    for t in (1024, 512, 256, 128):
        if t <= n and n % t == 0:
            return t
    return n


# ---------------------------------------------------------------------------
# Batched matmul + bias (used for the hoisted input projection and the FC).
# ---------------------------------------------------------------------------
def _matmul_bias_kernel(a_ref, w_ref, b_ref, o_ref):
    acc = jnp.dot(a_ref[...], w_ref[...], preferred_element_type=jnp.float32)
    o_ref[...] = (acc + b_ref[...]).astype(o_ref.dtype)


def matmul_bias_pallas(a, w, b):
    """a: (M, K), w: (K, N) bf16-castable, b: (1, N) f32.  Returns (M, N) f32."""
    M, K = a.shape
    N = w.shape[1]
    a = a.astype(jnp.bfloat16)       # MXU-native operands
    w = w.astype(jnp.bfloat16)
    tm = _pick_row_tile(M)
    tn = _pick_col_tile(N)
    return pl.pallas_call(
        _matmul_bias_kernel,
        out_shape=jax.ShapeDtypeStruct((M, N), jnp.float32),
        grid_spec=pltpu.PrefetchScalarGridSpec(
            num_scalar_prefetch=0,
            grid=(M // tm, N // tn),
            in_specs=[
                pl.BlockSpec((tm, K), lambda i, j: (i, 0)),
                pl.BlockSpec((K, tn), lambda i, j: (0, j)),
                pl.BlockSpec((1, tn), lambda i, j: (0, j)),
            ],
            out_specs=pl.BlockSpec((tm, tn), lambda i, j: (i, j)),
        ),
        compiler_params=pltpu.CompilerParams(
            dimension_semantics=("parallel", "parallel")),
    )(a, w, b)


# ---------------------------------------------------------------------------
# Recurrent LSTM core: only h @ W_hh + precomputed gx[t] per timestep.
# ---------------------------------------------------------------------------
def _lstm_recurrent_kernel(gx_ref, whh_ref, out_ref, h_sc, c_sc, *,
                           hidden, t_chunk):
    """One grid step == T_CHUNK timesteps; h/c carried in f32 VMEM scratch."""
    H = hidden

    @pl.when(pl.program_id(0) == 0)
    def _():
        h_sc[...] = jnp.zeros_like(h_sc)
        c_sc[...] = jnp.zeros_like(c_sc)

    w_hh = whh_ref[...]                                      # (H, 4H) bf16, hoisted

    def step(t, carry):
        h, c = carry                                         # f32 carries
        gates = gx_ref[t] + jnp.dot(h.astype(jnp.bfloat16), w_hh,
                                    preferred_element_type=jnp.float32)  # (B, 4H)
        # Gate order matches PyTorch LSTM: [i, f, g, o]; each slice is a
        # 128-aligned lane block because H is padded to a multiple of 128.
        i_g = jax.nn.sigmoid(gates[:, 0 * H:1 * H])
        f_g = jax.nn.sigmoid(gates[:, 1 * H:2 * H])
        g_g = jnp.tanh(gates[:, 2 * H:3 * H])
        o_g = jax.nn.sigmoid(gates[:, 3 * H:4 * H])
        c_new = f_g * c + i_g * g_g                          # f32 elementwise (VPU/EUP)
        h_new = o_g * jnp.tanh(c_new)
        out_ref[t] = h_new.astype(out_ref.dtype)             # bf16 h for the FC pass
        return h_new, c_new

    h, c = lax.fori_loop(0, t_chunk, step, (h_sc[...], c_sc[...]), unroll=True)
    h_sc[...] = h
    c_sc[...] = c


def lstm_recurrent_pallas(gx, w_hh, *, hidden_pad, t_chunk):
    """gx: (Tp, Bp, 4*Hp) f32 precomputed input gates.  Returns h: (Tp, Bp, Hp) bf16."""
    Tp, Bp, G = gx.shape
    kernel = functools.partial(_lstm_recurrent_kernel,
                               hidden=hidden_pad, t_chunk=t_chunk)
    return pl.pallas_call(
        kernel,
        out_shape=jax.ShapeDtypeStruct((Tp, Bp, hidden_pad), jnp.bfloat16),
        grid_spec=pltpu.PrefetchScalarGridSpec(
            num_scalar_prefetch=0,
            grid=(Tp // t_chunk,),
            in_specs=[
                pl.BlockSpec((t_chunk, Bp, G), lambda t: (t, 0, 0)),   # gx chunk
                pl.BlockSpec((hidden_pad, G), lambda t: (0, 0)),       # W_hh^T (resident)
            ],
            out_specs=pl.BlockSpec((t_chunk, Bp, hidden_pad), lambda t: (t, 0, 0)),
            scratch_shapes=[
                pltpu.VMEM((Bp, hidden_pad), jnp.float32),   # h carry
                pltpu.VMEM((Bp, hidden_pad), jnp.float32),   # c carry
            ],
        ),
        compiler_params=pltpu.CompilerParams(
            dimension_semantics=("arbitrary",)),             # sequential recurrence
    )(gx, w_hh.astype(jnp.bfloat16))


# ---------------------------------------------------------------------------
# Parameters (PyTorch-equivalent shapes) + padded / transposed kernel layouts.
# ---------------------------------------------------------------------------
class DecoderRNNParams:
    def __init__(self, embed_size, hidden_size, vocab_size, key):
        ks = jax.random.split(key, 7)
        s = 0.1
        self.embed_size = embed_size
        self.hidden_size = hidden_size
        self.vocab_size = vocab_size

        # Unpadded, reference-layout parameters (weights stored transposed).
        self.embed = jax.random.normal(ks[0], (vocab_size, embed_size), jnp.float32) * s
        self.w_ih = jax.random.normal(ks[1], (embed_size, 4 * hidden_size), jnp.float32) * s
        self.w_hh = jax.random.normal(ks[2], (hidden_size, 4 * hidden_size), jnp.float32) * s
        b_ih = jax.random.normal(ks[3], (4 * hidden_size,), jnp.float32) * s
        b_hh = jax.random.normal(ks[4], (4 * hidden_size,), jnp.float32) * s
        self.bias = (b_ih + b_hh).reshape(1, 4 * hidden_size)
        self.w_fc = jax.random.normal(ks[5], (hidden_size, vocab_size), jnp.float32) * s
        self.b_fc = (jax.random.normal(ks[6], (vocab_size,), jnp.float32) * s).reshape(1, vocab_size)

        # Lane-dense padded versions for the kernels (per-gate padding of H).
        Hp = _round_up(hidden_size, 128)
        Vp = _round_up(vocab_size, 128)
        self.hidden_pad = Hp
        self.vocab_pad = Vp

        def pad_gate_cols(w):   # (..., 4H) -> (..., 4Hp) padding each gate block
            w4 = w.reshape(w.shape[:-1] + (4, hidden_size))
            w4 = jnp.pad(w4, [(0, 0)] * (w4.ndim - 1) + [(0, Hp - hidden_size)])
            return w4.reshape(w.shape[:-1] + (4 * Hp,))

        self.w_ih_k = pad_gate_cols(self.w_ih).astype(jnp.bfloat16)       # (E, 4Hp)
        w_hh_p = pad_gate_cols(self.w_hh)                                  # (H, 4Hp)
        self.w_hh_k = jnp.pad(
            w_hh_p, ((0, Hp - hidden_size), (0, 0))).astype(jnp.bfloat16)  # (Hp, 4Hp)
        self.bias_k = pad_gate_cols(self.bias)                             # (1, 4Hp) f32
        self.w_fc_k = jnp.pad(
            self.w_fc, ((0, Hp - hidden_size), (0, Vp - vocab_size))
        ).astype(jnp.bfloat16)                                             # (Hp, Vp)
        self.b_fc_k = jnp.pad(self.b_fc, ((0, 0), (0, Vp - vocab_size)))   # (1, Vp) f32
        # NOTE: nn.LSTM dropout is a no-op for num_layers=1 and self.dropout is
        # never used in forward(), so neither is implemented.


# ---------------------------------------------------------------------------
# Forward pass (matches DecoderRNN.forward semantics).
# ---------------------------------------------------------------------------
def decoder_rnn_forward(params, features, captions):
    """features: (B, E) f32, captions: (B, S) int32.  Returns (B, S, V) f32."""
    # Embedding gather + concat of `features` as first timestep (plain-JAX glue).
    cap = captions[:, :-1]                                       # (B, S-1)
    emb = jnp.take(params.embed, cap, axis=0)                    # (B, S-1, E)
    x = jnp.concatenate([features[:, None, :], emb], axis=1)     # (B, T, E), T=S
    B, T, E = x.shape
    H, V = params.hidden_size, params.vocab_size
    Hp, Vp = params.hidden_pad, params.vocab_pad

    T_CHUNK = 8
    Bp = _round_up(B, 8)
    Tp = _round_up(T, T_CHUNK)

    x_tbe = jnp.transpose(x, (1, 0, 2))                          # time-major (T, B, E)
    x_tbe = jnp.pad(x_tbe, ((0, Tp - T), (0, Bp - B), (0, 0)))   # (Tp, Bp, E)

    # 1) Batched input projection over all T*B rows (fills the MXU, both TCs).
    gx = matmul_bias_pallas(x_tbe.reshape(Tp * Bp, E),
                            params.w_ih_k, params.bias_k)        # (Tp*Bp, 4Hp) f32
    gx = gx.reshape(Tp, Bp, 4 * Hp)

    # 2) Sequential recurrence: only h @ W_hh + gx[t] per step, chunked over time.
    h_all = lstm_recurrent_pallas(gx, params.w_hh_k,
                                  hidden_pad=Hp, t_chunk=T_CHUNK)  # (Tp, Bp, Hp) bf16

    # 3) Batched FC over all T*B rows.
    logits = matmul_bias_pallas(h_all.reshape(Tp * Bp, Hp),
                                params.w_fc_k, params.b_fc_k)    # (Tp*Bp, Vp) f32
    logits = logits.reshape(Tp, Bp, Vp)[:T, :B, :V]              # drop padding
    return jnp.transpose(logits, (1, 0, 2))                      # (B, T, V)


# ---------------------------------------------------------------------------
# Pure-JAX f32 reference (lax.scan LSTM) for correctness checking.
# ---------------------------------------------------------------------------
def _reference_forward(params, features, captions):
    cap = captions[:, :-1]
    emb = jnp.take(params.embed, cap, axis=0)
    x = jnp.concatenate([features[:, None, :], emb], axis=1)     # (B, T, E)
    B, T, E = x.shape
    H = params.hidden_size

    def step(carry, x_t):
        h, c = carry
        gates = x_t @ params.w_ih + h @ params.w_hh + params.bias
        i = jax.nn.sigmoid(gates[:, 0 * H:1 * H])
        f = jax.nn.sigmoid(gates[:, 1 * H:2 * H])
        g = jnp.tanh(gates[:, 2 * H:3 * H])
        o = jax.nn.sigmoid(gates[:, 3 * H:4 * H])
        c_new = f * c + i * g
        h_new = o * jnp.tanh(c_new)
        return (h_new, c_new), h_new

    h0 = jnp.zeros((B, H), jnp.float32)
    c0 = jnp.zeros((B, H), jnp.float32)
    _, hs = jax.lax.scan(step, (h0, c0), jnp.transpose(x, (1, 0, 2)))  # (T, B, H)
    out = hs @ params.w_fc + params.b_fc                               # (T, B, V)
    return jnp.transpose(out, (1, 0, 2))                               # (B, T, V)


if __name__ == "__main__":
    B, S, E, H, V = 2, 8, 32, 32, 48   # batch, caption length, embed, hidden, vocab

    key = jax.random.PRNGKey(0)
    k_params, k_feat, k_cap = jax.random.split(key, 3)

    params = DecoderRNNParams(embed_size=E, hidden_size=H, vocab_size=V, key=k_params)
    features = jax.random.normal(k_feat, (B, E), jnp.float32)
    captions = jax.random.randint(k_cap, (B, S), 0, V, dtype=jnp.int32)

    out = decoder_rnn_forward(params, features, captions)
    out = jax.block_until_ready(out)
    assert out.shape == (B, S, V), out.shape

    ref = jax.block_until_ready(_reference_forward(params, features, captions))
    # bf16 MXU operands (f32 accumulation) introduce ~1e-3-level drift vs f32 ref.
    np.testing.assert_allclose(np.asarray(out), np.asarray(ref), rtol=2e-2, atol=2e-2)

    print("KERNEL_OK")
</pallas_src>

<mosaic_0001>
module attributes {stable_mosaic.version = 11 : i64} {
  func.func @_matmul_bias_kernel(%arg0: i32, %arg1: i32, %arg2: memref<64x32xbf16, #tpu.memory_space<vmem>>, %arg3: memref<32x512xbf16, #tpu.memory_space<vmem>>, %arg4: memref<1x512xf32, #tpu.memory_space<vmem>>, %arg5: memref<64x512xf32, #tpu.memory_space<vmem>>) attributes {dimension_semantics = [#tpu.dimension_semantics<parallel>, #tpu.dimension_semantics<parallel>], iteration_bounds = array<i64: 1, 1>, scalar_prefetch = 0 : i64, scratch_operands = 0 : i64, tpu.core_type = #tpu.core_type<tc>, window_params = [{transform_indices = @transform_0, window_bounds = array<i64: 64, 32>}, {transform_indices = @transform_1, window_bounds = array<i64: 32, 512>}, {transform_indices = @transform_2, window_bounds = array<i64: 1, 512>}, {transform_indices = @transform_3, window_bounds = array<i64: 64, 512>}]} {
    %c0 = arith.constant 0 : index
    %c0_0 = arith.constant 0 : index
    %0 = vector.load %arg2[%c0, %c0_0] : memref<64x32xbf16, #tpu.memory_space<vmem>>, vector<64x32xbf16>
    %c0_1 = arith.constant 0 : index
    %c0_2 = arith.constant 0 : index
    %1 = vector.load %arg3[%c0_1, %c0_2] : memref<32x512xbf16, #tpu.memory_space<vmem>>, vector<32x512xbf16>
    %cst = arith.constant dense<0.000000e+00> : vector<64x512xf32>
    %2 = tpu.matmul %0, %1, %cst {dimension_numbers = #tpu.dot_dimension_numbers<[1], [0], [0], [1], [0, 0, 1, 1], [], []>} : vector<64x32xbf16>, vector<32x512xbf16>, vector<64x512xf32> -> vector<64x512xf32>
    %c0_3 = arith.constant 0 : index
    %c0_4 = arith.constant 0 : index
    %3 = vector.load %arg4[%c0_3, %c0_4] : memref<1x512xf32, #tpu.memory_space<vmem>>, vector<1x512xf32>
    %4 = vector.broadcast %3 : vector<1x512xf32> to vector<64x512xf32>
    %5 = arith.addf %2, %4 : vector<64x512xf32>
    %c0_5 = arith.constant 0 : index
    %c0_6 = arith.constant 0 : index
    %6 = vector.load %arg5[%c0_5, %c0_6] : memref<64x512xf32, #tpu.memory_space<vmem>>, vector<64x512xf32>
    tpu.vector_store %arg5[%c0_5, %c0_6], %5 {strides = array<i32>} : memref<64x512xf32, #tpu.memory_space<vmem>>, vector<64x512xf32>,
    return
  }
  func.func @transform_0(%arg0: i32, %arg1: i32) -> (i32, i32) {
    %c0_i32 = arith.constant 0 : i32
    %c0_i32_0 = arith.constant 0 : i32
    return %arg0, %c0_i32 : i32, i32
  }
  func.func @transform_1(%arg0: i32, %arg1: i32) -> (i32, i32) {
    %c0_i32 = arith.constant 0 : i32
    %c0_i32_0 = arith.constant 0 : i32
    return %c0_i32, %arg1 : i32, i32
  }
  func.func @transform_2(%arg0: i32, %arg1: i32) -> (i32, i32) {
    %c0_i32 = arith.constant 0 : i32
    %c0_i32_0 = arith.constant 0 : i32
    return %c0_i32, %arg1 : i32, i32
  }
  func.func @transform_3(%arg0: i32, %arg1: i32) -> (i32, i32) {
    %c0_i32 = arith.constant 0 : i32
    return %arg0, %arg1 : i32, i32
  }
}

</mosaic_0001>

<bundles_post_ra>
// kernel: tpu_custom_call.1
= control target key start
LH: loop header
LB: loop body
LE: loop exit
PB: predicated region body
PF: predicated region fallthrough
CT: control target
= control target key end

     0   :  { %8 = vsyncpa [#allocation3], 0  ;;  %s535_s0 = inlined_call_operand.vmem [shape: bf16[64,32], index: 0, kind: input, shape index: {}]   ;;  %s536_s1 = inlined_call_operand.hbm [shape: bf16[32,512], index: 1, kind: input, shape index: {}]   ;;  %s537_s2 = inlined_call_operand.vmem [shape: f32[1,512], index: 2, kind: input, shape index: {}]   ;;  %s538_s3 = inlined_call_operand.hbm [shape: f32[64,512], index: 3, kind: output, shape index: {}]  }
   0x1   :  { %9 = vsyncpa [#allocation4], 0  ;;  %s16_s14 = sshll.u32 %s536_s1, 4  ;;  %s432_s15 = smov [#allocation2]   ;;  %s17_s14 = int_to_ptr.hbm [resolvable:$true] %s16_s14 }
   0x2   :  { %s18_s16 = sshll.u32 %s432_s15, 4  ;;  %s433_s17 = smov 256   ;;  %s19_s16 = int_to_ptr.vmem [resolvable:$true] %s18_s16 }
   0x3   :  { %s434_s18 = smov 16  }
   0x4   :  { %24 = dma.hbm_to_vmem [thread:$0]  %s17_s14, 1024, %s19_s16, [#allocation3], %s433_s17, %s433_s17, %s434_s18  }
   0x5   :  { %428 = dma.done.wait [#allocation3], 1024  }
   0x6   :  { %429 = vsyncadd [#allocation3], 4294966272  ;;  %v332_v0 = vld [vmem:[#allocation2 + $0x20] sm:$0xf]  ;;  %v372_v1 = vld [vmem:[#allocation2 + $0x2c] sm:$0xf0] }
   0x7   :  { %v370_v2 = vld [vmem:[#allocation2 + $0x24] sm:$0xf]  ;;  %v333_v3 = vor.u32 %v372_v1, %v332_v0  ;;  %v334_v4 = vld [vmem:[#allocation2 + $0x30] sm:$0xf0]  ;;  %v340_v5 = vld [vmem:[#allocation2 + $0x28] sm:$0xf] }
   0x8   :  { %v373_v6 = vld [vmem:[#allocation2 + $0x34] sm:$0xf0]  ;;  %v337_v7 = vor.u32 %v370_v2, %v334_v4  ;;  %v371_v9 = vld [vmem:[#allocation2 + $0x2c] sm:$0xf]  ;;  %v342_v10 = vld [vmem:[#allocation2 + $0x38] sm:$0xf0] }
   0x9   :  { %v341_v8 = vor.u32 %v373_v6, %v340_v5  ;;  %v316_v11 = vld [vmem:[#allocation2] sm:$0xf]  ;;  %137 = vmatpush.bf16.msra.mxu0 %v333_v3  ;;  %v345_v12 = vor.u32 %v371_v9, %v342_v10  ;;  %v368_v13 = vld [vmem:[#allocation2 + $0xc] sm:$0xf0]  ;;  %v366_v14 = vld [vmem:[#allocation2 + $0x4] sm:$0xf] }
   0xa   :  { %v318_v15 = vld [vmem:[#allocation2 + $0x10] sm:$0xf0]  ;;  %166 = vmatpush.bf16.msra.mxu1 %v337_v7  ;;  %v317_v16 = vor.u32 %v368_v13, %v316_v11  ;;  %v324_v18 = vld [vmem:[#allocation2 + $0x8] sm:$0xf]  ;;  %v369_v19 = vld [vmem:[#allocation2 + $0x14] sm:$0xf0] }
   0xb   :  { %195 = vmatpush.bf16.msra.mxu2 %v341_v8  ;;  %v321_v17 = vor.u32 %v366_v14, %v318_v15  ;;  %v367_v20 = vld [vmem:[#allocation2 + $0xc] sm:$0xf]  ;;  %224 = vmatpush.bf16.msra.mxu3 %v345_v12  ;;  %v325_v21 = vor.u32 %v369_v19, %v324_v18  ;;  %v326_v22 = vld [vmem:[#allocation2 + $0x18] sm:$0xf0]  ;;  %v362_v24 = vld [vmem:[%s535_s0] sm:$0xff]  ;;  %vm118_vm0 = vcmask 261120  }
   0xc   :  { %v329_v23 = vor.u32 %v367_v20, %v326_v22  ;;  %v363_v25 = vld [vmem:[%s535_s0 + $0x8] sm:$0xff]  ;;  %v364_v26 = vld [vmem:[%s535_s0 + $0x10] sm:$0xff]  ;;  %v365_v27 = vld [vmem:[%s535_s0 + $0x18] sm:$0xff]  ;;  %s435_s0 = smov [#allocation5]   ;;  %s285_s30 = sshll.u32 %s538_s3, 4  ;;  %s286_s30 = int_to_ptr.hbm [resolvable:$true] %s285_s30 }
   0xd   :  { %138 = vmatpush.bf16.msra.mxu0 %v317_v16  ;;  %v48_v28 = vld [vmem:[%s537_s2] sm:$0xf]  ;;  %s283_s2 = sshll.u32 %s435_s0, 4  ;;  %s436_s4 = smov 512   ;;  %s284_s2 = int_to_ptr.vmem [resolvable:$true] %s283_s2 }
   0xe   :  { %167 = vmatpush.bf16.msra.mxu1 %v321_v17  ;;  %v492_v29 = vperm.slane %v48_v28, 0  ;;  %v494_v30 = vperm.slane %v48_v28, 1  ;;  %v498_v35 = vperm.slane %v48_v28, 2  ;;  %v500_v36 = vperm.slane %v48_v28, 3  ;;  %s437_s5 = smov 32  }
   0xf   :  { %196 = vmatpush.bf16.msra.mxu2 %v325_v21  ;;  %225 = vmatpush.bf16.msra.mxu3 %v329_v23 }
  0x10   :  { %346 = vmatmul.msk.bf16.vlgmr.msra.gmra.mxu0 %vm118_vm0, %v362_v24 }
  0x11   :  { %350 = vmatmul.msk.bf16.vlgmr.msra.gmra.mxu1 %vm118_vm0, %v362_v24 }
  0x12   :  { %354 = vmatmul.msk.bf16.vlgmr.msra.gmra.mxu2 %vm118_vm0, %v362_v24  ;;  %358 = vmatmul.msk.bf16.vlgmr.msra.gmra.mxu3 %vm118_vm0, %v362_v24 }
  0x20   :  { %347 = vmatmul.msk.bf16.gmra.mxu0 %vm118_vm0, %v363_v25 }
  0x21   :  { %351 = vmatmul.msk.bf16.gmra.mxu1 %vm118_vm0, %v363_v25 }
  0x22   :  { %355 = vmatmul.msk.bf16.gmra.mxu2 %vm118_vm0, %v363_v25  ;;  %359 = vmatmul.msk.bf16.gmra.mxu3 %vm118_vm0, %v363_v25 }
  0x30   :  { %348 = vmatmul.msk.bf16.gmra.mxu0 %vm118_vm0, %v364_v26 }
  0x31   :  { %352 = vmatmul.msk.bf16.gmra.mxu1 %vm118_vm0, %v364_v26 }
  0x32   :  { %356 = vmatmul.msk.bf16.gmra.mxu2 %vm118_vm0, %v364_v26  ;;  %360 = vmatmul.msk.bf16.gmra.mxu3 %vm118_vm0, %v364_v26 }
  0x40   :  { %349 = vmatmul.msk.bf16.gmra.mxu0 %vm118_vm0, %v365_v27 }
  0x41   :  { %353 = vmatmul.msk.bf16.gmra.mxu1 %vm118_vm0, %v365_v27 }
  0x42   :  { %357 = vmatmul.msk.bf16.gmra.mxu2 %vm118_vm0, %v365_v27  ;;  %361 = vmatmul.msk.bf16.gmra.mxu3 %vm118_vm0, %v365_v27 }
  0x8d   :  { %v140_v31 = vpop.f32.mrf.mxu0 }
  0x8e   :  { %v141_v32 = vadd.f32 %v140_v31, %v492_v29  ;;  %v169_v33 = vpop.f32.mrf.mxu1 }
  0x8f   :  { %v170_v34 = vadd.f32 %v169_v33, %v494_v30 }
  0x90   :  { %247 = vst [vmem:[#allocation5] sm:$0xff] %v141_v32 }
  0x91   :  { %248 = vst [vmem:[#allocation5 + $0x8] sm:$0xff] %v170_v34 }
  0x95   :  { %v198_v37 = vpop.f32.mrf.mxu2  ;;  %v227_v39 = vpop.f32.mrf.mxu3 }
  0x96   :  { %v199_v38 = vadd.f32 %v198_v37, %v498_v35  ;;  %v142_v40 = vpop.f32.mrf.mxu0  ;;  %v228_v41 = vadd.f32 %v227_v39, %v500_v36  ;;  %v171_v43 = vpop.f32.mrf.mxu1 }
  0x97   :  { %v143_v42 = vadd.f32 %v142_v40, %v492_v29  ;;  %v172_v44 = vadd.f32 %v171_v43, %v494_v30 }
  0x98   :  { %249 = vst [vmem:[#allocation5 + $0x10] sm:$0xff] %v199_v38 }
  0x99   :  { %250 = vst [vmem:[#allocation5 + $0x18] sm:$0xff] %v228_v41 }
  0x9a   :  { %251 = vst [vmem:[#allocation5 + $0x20] sm:$0xff] %v143_v42 }
  0x9b   :  { %252 = vst [vmem:[#allocation5 + $0x28] sm:$0xff] %v172_v44 }
  0x9d   :  { %v200_v45 = vpop.f32.mrf.mxu2  ;;  %v229_v47 = vpop.f32.mrf.mxu3 }
  0x9e   :  { %v201_v46 = vadd.f32 %v200_v45, %v498_v35  ;;  %v145_v48 = vpop.f32.mrf.mxu0  ;;  %v230_v49 = vadd.f32 %v229_v47, %v500_v36  ;;  %v174_v51 = vpop.f32.mrf.mxu1 }
  0x9f   :  { %v146_v50 = vadd.f32 %v145_v48, %v492_v29  ;;  %v175_v52 = vadd.f32 %v174_v51, %v494_v30 }
  0xa0   :  { %253 = vst [vmem:[#allocation5 + $0x30] sm:$0xff] %v201_v46 }
  0xa1   :  { %254 = vst [vmem:[#allocation5 + $0x38] sm:$0xff] %v230_v49 }
  0xa2   :  { %255 = vst [vmem:[#allocation5 + $0x40] sm:$0xff] %v146_v50 }
  0xa3   :  { %256 = vst [vmem:[#allocation5 + $0x48] sm:$0xff] %v175_v52 }
  0xa5   :  { %v203_v53 = vpop.f32.mrf.mxu2  ;;  %v232_v55 = vpop.f32.mrf.mxu3 }
  0xa6   :  { %v204_v54 = vadd.f32 %v203_v53, %v498_v35  ;;  %v147_v56 = vpop.f32.mrf.mxu0  ;;  %v233_v57 = vadd.f32 %v232_v55, %v500_v36  ;;  %v176_v59 = vpop.f32.mrf.mxu1 }
  0xa7   :  { %v148_v58 = vadd.f32 %v147_v56, %v492_v29  ;;  %v177_v60 = vadd.f32 %v176_v59, %v494_v30 }
  0xa8   :  { %257 = vst [vmem:[#allocation5 + $0x50] sm:$0xff] %v204_v54 }
  0xa9   :  { %258 = vst [vmem:[#allocation5 + $0x58] sm:$0xff] %v233_v57 }
  0xaa   :  { %259 = vst [vmem:[#allocation5 + $0x60] sm:$0xff] %v148_v58 }
  0xab   :  { %260 = vst [vmem:[#allocation5 + $0x68] sm:$0xff] %v177_v60 }
  0xad   :  { %v205_v61 = vpop.f32.mrf.mxu2  ;;  %v234_v63 = vpop.f32.mrf.mxu3 }
  0xae   :  { %v206_v62 = vadd.f32 %v205_v61, %v498_v35  ;;  %v150_v0 = vpop.f32.mrf.mxu0  ;;  %v235_v1 = vadd.f32 %v234_v63, %v500_v36  ;;  %v179_v3 = vpop.f32.mrf.mxu1 }
  0xaf   :  { %v151_v2 = vadd.f32 %v150_v0, %v492_v29  ;;  %v180_v4 = vadd.f32 %v179_v3, %v494_v30 }
  0xb0   :  { %261 = vst [vmem:[#allocation5 + $0x70] sm:$0xff] %v206_v62 }
  0xb1   :  { %262 = vst [vmem:[#allocation5 + $0x78] sm:$0xff] %v235_v1 }
  0xb2   :  { %263 = vst [vmem:[#allocation5 + $0x80] sm:$0xff] %v151_v2 }
  0xb3   :  { %264 = vst [vmem:[#allocation5 + $0x88] sm:$0xff] %v180_v4 }
  0xb5   :  { %v208_v5 = vpop.f32.mrf.mxu2  ;;  %v237_v7 = vpop.f32.mrf.mxu3 }
  0xb6   :  { %v209_v6 = vadd.f32 %v208_v5, %v498_v35  ;;  %v152_v8 = vpop.f32.mrf.mxu0  ;;  %v238_v9 = vadd.f32 %v237_v7, %v500_v36  ;;  %v181_v11 = vpop.f32.mrf.mxu1 }
  0xb7   :  { %v153_v10 = vadd.f32 %v152_v8, %v492_v29  ;;  %v182_v12 = vadd.f32 %v181_v11, %v494_v30 }
  0xb8   :  { %265 = vst [vmem:[#allocation5 + $0x90] sm:$0xff] %v209_v6 }
  0xb9   :  { %266 = vst [vmem:[#allocation5 + $0x98] sm:$0xff] %v238_v9 }
  0xba   :  { %267 = vst [vmem:[#allocation5 + $0xa0] sm:$0xff] %v153_v10 }
  0xbb   :  { %268 = vst [vmem:[#allocation5 + $0xa8] sm:$0xff] %v182_v12 }
  0xbd   :  { %v210_v13 = vpop.f32.mrf.mxu2  ;;  %v239_v15 = vpop.f32.mrf.mxu3 }
  0xbe   :  { %v211_v14 = vadd.f32 %v210_v13, %v498_v35  ;;  %v155_v16 = vpop.f32.mrf.mxu0  ;;  %v240_v17 = vadd.f32 %v239_v15, %v500_v36  ;;  %v184_v19 = vpop.f32.mrf.mxu1 }
  0xbf   :  { %v156_v18 = vadd.f32 %v155_v16, %v492_v29  ;;  %v185_v20 = vadd.f32 %v184_v19, %v494_v30 }
  0xc0   :  { %269 = vst [vmem:[#allocation5 + $0xb0] sm:$0xff] %v211_v14 }
  0xc1   :  { %270 = vst [vmem:[#allocation5 + $0xb8] sm:$0xff] %v240_v17 }
  0xc2   :  { %271 = vst [vmem:[#allocation5 + $0xc0] sm:$0xff] %v156_v18 }
  0xc3   :  { %272 = vst [vmem:[#allocation5 + $0xc8] sm:$0xff] %v185_v20 }
  0xc5   :  { %v213_v21 = vpop.f32.mrf.mxu2  ;;  %v242_v23 = vpop.f32.mrf.mxu3 }
  0xc6   :  { %v214_v22 = vadd.f32 %v213_v21, %v498_v35  ;;  %v157_v24 = vpop.f32.mrf.mxu0  ;;  %v243_v25 = vadd.f32 %v242_v23, %v500_v36  ;;  %v186_v27 = vpop.f32.mrf.mxu1 }
  0xc7   :  { %v158_v26 = vadd.f32 %v157_v24, %v492_v29  ;;  %v187_v28 = vadd.f32 %v186_v27, %v494_v30 }
  0xc8   :  { %273 = vst [vmem:[#allocation5 + $0xd0] sm:$0xff] %v214_v22 }
  0xc9   :  { %274 = vst [vmem:[#allocation5 + $0xd8] sm:$0xff] %v243_v25 }
  0xca   :  { %275 = vst [vmem:[#allocation5 + $0xe0] sm:$0xff] %v158_v26 }
  0xcb   :  { %276 = vst [vmem:[#allocation5 + $0xe8] sm:$0xff] %v187_v28 }
  0xcd   :  { %v215_v31 = vpop.f32.mrf.mxu2  ;;  %v244_v33 = vpop.f32.mrf.mxu3 }
  0xce   :  { %v216_v32 = vadd.f32 %v215_v31, %v498_v35  ;;  %v245_v29 = vadd.f32 %v244_v33, %v500_v36 }
  0xd0   :  { %277 = vst [vmem:[#allocation5 + $0xf0] sm:$0xff] %v216_v32 }
  0xd1   :  { %278 = vst [vmem:[#allocation5 + $0xf8] sm:$0xff] %v245_v29 }
  0xd2   :  { %291 = dma.vmem_to_hbm [thread:$0]  %s284_s2, 4096, %s286_s30, [#allocation4], %s436_s4, %s436_s4, %s437_s5  }
  0xd3   :  { %430 = dma.done.wait [#allocation4], 4096  }
  0xd4   :  { %431 = vsyncadd [#allocation4], 4294963200 }
  0xd5   :  { %296 = vsyncpa [#allocation3], 1 }
  0xd6   :  { %297 = vsyncpa [#allocation4], 1 }

</bundles_post_ra>
